<compile_context>
chip_gen: v7x
topology: tpu7x:2x2x1
jax: 0.10.0
libtpu: 0.0.40
codegen_flags: <defaults>
</compile_context>

<pallas_src>
import math
from functools import partial

import jax
import jax.numpy as jnp
from jax.experimental import pallas as pl
from jax.experimental.pallas import tpu as pltpu

B_INIT_VALUE = 0.1
LOG_SIG_MAX = 2.0
LOG_SIG_MIN = -20.0
W_INIT_VALUE = 0.003


def _round_up(x, m):
    return ((x + m - 1) // m) * m


def policy_kernel(obs_ref, w1_ref, w23_ref, bh_ref, wh_ref, bhd_ref, out_ref,
                  *, head_pad):
    # bf16 operands feed the MXU single-pass; accumulate in f32.
    x = obs_ref[...].astype(jnp.bfloat16)

    # layer 1 + ReLU
    h = jnp.dot(x, w1_ref[...], preferred_element_type=jnp.float32) + bh_ref[0:1, :]
    h = jnp.maximum(h, 0.0)

    # layer 2 + ReLU  (w23_ref[0] is w2)
    h = jnp.dot(h.astype(jnp.bfloat16), w23_ref[0],
                preferred_element_type=jnp.float32) + bh_ref[1:2, :]
    h = jnp.maximum(h, 0.0)

    # layer 3 + ReLU  (w23_ref[1] is w3)
    h = jnp.dot(h.astype(jnp.bfloat16), w23_ref[1],
                preferred_element_type=jnp.float32) + bh_ref[2:3, :]
    h = jnp.maximum(h, 0.0)

    # fused heads: [mean | log_std], each zero-padded to `head_pad` lanes so the
    # two stores below are full 128-lane-aligned slabs (no masked vst.msk).
    y = jnp.dot(h.astype(jnp.bfloat16), wh_ref[...],
                preferred_element_type=jnp.float32) + bhd_ref[...]

    # mean lanes: pass through
    out_ref[:, :head_pad] = y[:, :head_pad].astype(out_ref.dtype)
    # std = clamp(exp(log_std), LOG_SIG_MIN, LOG_SIG_MAX) — clamp applied AFTER
    # exp, exactly as in the PyTorch module (clamps std, not log_std).
    std = jnp.clip(jnp.exp(y[:, head_pad:]), LOG_SIG_MIN, LOG_SIG_MAX)
    out_ref[:, head_pad:] = std.astype(out_ref.dtype)


def _prep_operands(params, head_pad):
    """Fuse/pad operands on the wrapper side (plain JAX glue)."""
    def pad_cols(x, width):
        return jnp.pad(x, ((0, 0), (0, width - x.shape[1])))

    w_head = jnp.concatenate(
        [pad_cols(params["wm"], head_pad), pad_cols(params["ws"], head_pad)], axis=1)
    b_head = jnp.concatenate(
        [pad_cols(params["bm"], head_pad), pad_cols(params["bs"], head_pad)], axis=1)
    b_hidden = jnp.concatenate([params["b1"], params["b2"], params["b3"]], axis=0)
    w23 = jnp.stack([params["w2"], params["w3"]], axis=0)

    return (params["w1"].astype(jnp.bfloat16),        # (I, H)
            w23.astype(jnp.bfloat16),                  # (2, H, H)
            b_hidden.astype(jnp.float32),              # (3, H)
            w_head.astype(jnp.bfloat16),               # (H, 2*head_pad)
            b_head.astype(jnp.float32))                # (1, 2*head_pad)


def _policy_forward_impl(obs, w1, w23, b_hidden, w_head, b_head, head_pad,
                         batch_tile, single_buffer_weights):
    B, num_inputs = obs.shape
    H = w1.shape[1]
    out_cols = 2 * head_pad

    # Batch tile: fewer, fatter grid steps amortize the ~0.35us/step overhead.
    # For large batches keep at least 2 grid steps so the "parallel" batch axis
    # can shard across v7x's two TensorCores (no-op on v5e/v6e).
    if B >= 512:
        tb = min(batch_tile, _round_up(pl.cdiv(B, 2), 256))
    else:
        tb = min(batch_tile, B)
    tb = min(tb, B)
    if tb != B:
        tb = max(8, (tb // 8) * 8)   # sublane-align partial-batch tiles
    grid = (pl.cdiv(B, tb),)

    weight_pm = pl.Buffered(buffer_count=1) if single_buffer_weights else None

    def const_spec(shape):
        nd = len(shape)
        return pl.BlockSpec(shape, lambda i, _n=nd: (0,) * _n,
                            pipeline_mode=weight_pm)

    # VMEM budget: bf16 weights (single- or double-buffered), f32 biases,
    # double-buffered obs/out tiles; cap at 48 MiB for v7x headroom.
    wbytes = (w1.size + w23.size + w_head.size) * 2
    bbytes = (b_hidden.size + b_head.size) * 4
    iobytes = 2 * (tb * num_inputs * 4 + tb * out_cols * 4)
    wmult = 1 if single_buffer_weights else 2
    est = wmult * wbytes + 2 * bbytes + iobytes
    vmem_limit = min(48 * 1024 * 1024,
                     max(16 * 1024 * 1024, int(1.5 * est) + (2 << 20)))

    flops = 2 * B * (num_inputs * H + 2 * H * H + H * out_cols)
    cost = pl.CostEstimate(
        flops=flops,
        transcendentals=B * head_pad,
        bytes_accessed=B * num_inputs * 4 + B * out_cols * 4 + wbytes + bbytes)

    kernel = partial(policy_kernel, head_pad=head_pad)

    return pl.pallas_call(
        kernel,
        out_shape=jax.ShapeDtypeStruct((B, out_cols), jnp.float32),
        grid=grid,
        in_specs=[
            pl.BlockSpec((tb, num_inputs), lambda i: (i, 0)),  # obs: batch-tiled
            const_spec((num_inputs, H)),                        # w1 (bf16, resident)
            const_spec((2, H, H)),                              # w2 | w3 stacked
            const_spec((3, H)),                                 # hidden biases
            const_spec((H, out_cols)),                          # fused head weights
            const_spec((1, out_cols)),                          # fused head biases
        ],
        out_specs=pl.BlockSpec((tb, out_cols), lambda i: (i, 0)),
        compiler_params=pltpu.CompilerParams(
            dimension_semantics=("parallel",),
            vmem_limit_bytes=vmem_limit),
        cost_estimate=cost,
    )(obs, w1, w23, b_hidden, w_head, b_head)


def policy_forward(obs, params, *, batch_tile=1024):
    """obs: [B, num_inputs] float32.  Returns (mean, std), each [B, num_actions]."""
    A = params["wm"].shape[1]
    head_pad = _round_up(A, 128)   # lane-dense head: each head padded to 128 lanes

    ops = _prep_operands(params, head_pad)
    try:
        out = _policy_forward_impl(obs, *ops, head_pad, batch_tile,
                                   single_buffer_weights=True)
    except Exception:
        # Fallback if pl.Buffered(1) (single-buffered resident weights) is not
        # supported by this jax build; everything else is identical.
        out = _policy_forward_impl(obs, *ops, head_pad, batch_tile,
                                   single_buffer_weights=False)

    return out[:, :A], out[:, head_pad:head_pad + A]


# ------------------------- init + references + test -------------------------

def fanin_init(key, shape):
    fan_in = shape[0]
    bound = 1.0 / math.sqrt(fan_in)
    return jax.random.uniform(key, shape, jnp.float32, -bound, bound)


def init_params(key, num_inputs, num_actions, hidden_sizes):
    ks = jax.random.split(key, 4)
    params = {
        "w1": fanin_init(ks[0], (num_inputs, hidden_sizes)),
        "b1": jnp.full((1, hidden_sizes), B_INIT_VALUE, jnp.float32),
        "w2": fanin_init(ks[1], (hidden_sizes, hidden_sizes)),
        "b2": jnp.full((1, hidden_sizes), B_INIT_VALUE, jnp.float32),
        "w3": fanin_init(ks[2], (hidden_sizes, hidden_sizes)),
        "b3": jnp.full((1, hidden_sizes), B_INIT_VALUE, jnp.float32),
    }
    kh = jax.random.split(ks[3], 4)
    params["wm"] = jax.random.uniform(kh[0], (hidden_sizes, num_actions),
                                      jnp.float32, -W_INIT_VALUE, W_INIT_VALUE)
    params["bm"] = jax.random.uniform(kh[1], (1, num_actions),
                                      jnp.float32, -W_INIT_VALUE, W_INIT_VALUE)
    params["ws"] = jax.random.uniform(kh[2], (hidden_sizes, num_actions),
                                      jnp.float32, -W_INIT_VALUE, W_INIT_VALUE)
    params["bs"] = jax.random.uniform(kh[3], (1, num_actions),
                                      jnp.float32, -W_INIT_VALUE, W_INIT_VALUE)
    return params


def reference_forward_f32(obs, p):
    h = jax.nn.relu(obs @ p["w1"] + p["b1"])
    h = jax.nn.relu(h @ p["w2"] + p["b2"])
    h = jax.nn.relu(h @ p["w3"] + p["b3"])
    mean = h @ p["wm"] + p["bm"]
    std = jnp.exp(h @ p["ws"] + p["bs"])
    return mean, jnp.clip(std, LOG_SIG_MIN, LOG_SIG_MAX)


def reference_forward_bf16(obs, p):
    # Mirrors the kernel numerics: bf16 matmul operands, f32 accumulation.
    def mm(a, w):
        return jnp.dot(a.astype(jnp.bfloat16), w.astype(jnp.bfloat16),
                       preferred_element_type=jnp.float32)
    h = jax.nn.relu(mm(obs, p["w1"]) + p["b1"])
    h = jax.nn.relu(mm(h, p["w2"]) + p["b2"])
    h = jax.nn.relu(mm(h, p["w3"]) + p["b3"])
    mean = mm(h, p["wm"]) + p["bm"]
    std = jnp.exp(mm(h, p["ws"]) + p["bs"])
    return mean, jnp.clip(std, LOG_SIG_MIN, LOG_SIG_MAX)


if __name__ == "__main__":
    key = jax.random.PRNGKey(0)
    k_obs, k_par = jax.random.split(key)

    batch, num_inputs, num_actions, hidden_sizes = 8, 16, 4, 32

    obs = jax.random.normal(k_obs, (batch, num_inputs), jnp.float32)
    params = init_params(k_par, num_inputs, num_actions, hidden_sizes)

    mean, std = policy_forward(obs, params)
    jax.block_until_ready((mean, std))

    # Tight check against a reference that mirrors the bf16-operand numerics.
    ref_mean_b, ref_std_b = reference_forward_bf16(obs, params)
    assert jnp.allclose(mean, ref_mean_b, atol=1e-3, rtol=1e-3), "mean mismatch (bf16 ref)"
    assert jnp.allclose(std, ref_std_b, atol=1e-3, rtol=1e-3), "std mismatch (bf16 ref)"

    # Loose check against the full-f32 reference (bf16 MXU operands).
    ref_mean, ref_std = reference_forward_f32(obs, params)
    assert jnp.allclose(mean, ref_mean, atol=5e-2, rtol=5e-2), "mean mismatch (f32 ref)"
    assert jnp.allclose(std, ref_std, atol=5e-2, rtol=5e-2), "std mismatch (f32 ref)"

    print("KERNEL_OK")
</pallas_src>

<mosaic_0001>
module attributes {stable_mosaic.version = 11 : i64} {
  func.func @policy_kernel(%arg0: i32, %arg1: memref<8x16xf32, #tpu.memory_space<vmem>>, %arg2: memref<16x32xbf16, #tpu.memory_space<vmem>>, %arg3: memref<2x32x32xbf16, #tpu.memory_space<vmem>>, %arg4: memref<3x32xf32, #tpu.memory_space<vmem>>, %arg5: memref<32x256xbf16, #tpu.memory_space<vmem>>, %arg6: memref<1x256xf32, #tpu.memory_space<vmem>>, %arg7: memref<8x256xf32, #tpu.memory_space<vmem>>) attributes {dimension_semantics = [#tpu.dimension_semantics<parallel>], iteration_bounds = array<i64: 1>, scalar_prefetch = 0 : i64, scratch_operands = 0 : i64, tpu.core_type = #tpu.core_type<tc>, window_params = [{transform_indices = @transform_0, window_bounds = array<i64: 8, 16>}, {pipeline_mode = #tpu.pipeline_mode<synchronous>, transform_indices = @transform_1, window_bounds = array<i64: 16, 32>}, {pipeline_mode = #tpu.pipeline_mode<synchronous>, transform_indices = @transform_2, window_bounds = array<i64: 2, 32, 32>}, {pipeline_mode = #tpu.pipeline_mode<synchronous>, transform_indices = @transform_3, window_bounds = array<i64: 3, 32>}, {pipeline_mode = #tpu.pipeline_mode<synchronous>, transform_indices = @transform_4, window_bounds = array<i64: 32, 256>}, {pipeline_mode = #tpu.pipeline_mode<synchronous>, transform_indices = @transform_5, window_bounds = array<i64: 1, 256>}, {transform_indices = @transform_6, window_bounds = array<i64: 8, 256>}]} {
    %c0 = arith.constant 0 : index
    %c0_0 = arith.constant 0 : index
    %0 = vector.load %arg1[%c0, %c0_0] : memref<8x16xf32, #tpu.memory_space<vmem>>, vector<8x16xf32>
    %1 = arith.truncf %0 : vector<8x16xf32> to vector<8x16xbf16>
    %c0_1 = arith.constant 0 : index
    %c0_2 = arith.constant 0 : index
    %2 = vector.load %arg2[%c0_1, %c0_2] : memref<16x32xbf16, #tpu.memory_space<vmem>>, vector<16x32xbf16>
    %cst = arith.constant dense<0.000000e+00> : vector<8x32xf32>
    %3 = tpu.matmul %1, %2, %cst {dimension_numbers = #tpu.dot_dimension_numbers<[1], [0], [0], [1], [0, 0, 1, 1], [], []>} : vector<8x16xbf16>, vector<16x32xbf16>, vector<8x32xf32> -> vector<8x32xf32>
    %c0_3 = arith.constant 0 : index
    %c0_4 = arith.constant 0 : index
    %4 = vector.load %arg4[%c0_3, %c0_4] : memref<3x32xf32, #tpu.memory_space<vmem>>, vector<1x32xf32>
    %5 = vector.broadcast %4 : vector<1x32xf32> to vector<8x32xf32>
    %6 = arith.addf %3, %5 : vector<8x32xf32>
    %cst_5 = arith.constant 0.000000e+00 : f32
    %7 = vector.broadcast %cst_5 : f32 to vector<8x32xf32>
    %8 = arith.maximumf %6, %7 : vector<8x32xf32>
    %9 = arith.truncf %8 : vector<8x32xf32> to vector<8x32xbf16>
    %c0_6 = arith.constant 0 : index
    %c0_7 = arith.constant 0 : index
    %c0_8 = arith.constant 0 : index
    %10 = vector.load %arg3[%c0_6, %c0_7, %c0_8] : memref<2x32x32xbf16, #tpu.memory_space<vmem>>, vector<1x32x32xbf16>
    %11 = vector.shape_cast %10 : vector<1x32x32xbf16> to vector<32x32xbf16>
    %cst_9 = arith.constant dense<0.000000e+00> : vector<8x32xf32>
    %12 = tpu.matmul %9, %11, %cst_9 {dimension_numbers = #tpu.dot_dimension_numbers<[1], [0], [0], [1], [0, 0, 1, 1], [], []>} : vector<8x32xbf16>, vector<32x32xbf16>, vector<8x32xf32> -> vector<8x32xf32>
    %c1 = arith.constant 1 : index
    %c0_10 = arith.constant 0 : index
    %13 = vector.load %arg4[%c1, %c0_10] : memref<3x32xf32, #tpu.memory_space<vmem>>, vector<1x32xf32>
    %14 = vector.broadcast %13 : vector<1x32xf32> to vector<8x32xf32>
    %15 = arith.addf %12, %14 : vector<8x32xf32>
    %cst_11 = arith.constant 0.000000e+00 : f32
    %16 = vector.broadcast %cst_11 : f32 to vector<8x32xf32>
    %17 = arith.maximumf %15, %16 : vector<8x32xf32>
    %18 = arith.truncf %17 : vector<8x32xf32> to vector<8x32xbf16>
    %c1_12 = arith.constant 1 : index
    %c0_13 = arith.constant 0 : index
    %c0_14 = arith.constant 0 : index
    %19 = vector.load %arg3[%c1_12, %c0_13, %c0_14] : memref<2x32x32xbf16, #tpu.memory_space<vmem>>, vector<1x32x32xbf16>
    %20 = vector.shape_cast %19 : vector<1x32x32xbf16> to vector<32x32xbf16>
    %cst_15 = arith.constant dense<0.000000e+00> : vector<8x32xf32>
    %21 = tpu.matmul %18, %20, %cst_15 {dimension_numbers = #tpu.dot_dimension_numbers<[1], [0], [0], [1], [0, 0, 1, 1], [], []>} : vector<8x32xbf16>, vector<32x32xbf16>, vector<8x32xf32> -> vector<8x32xf32>
    %c2 = arith.constant 2 : index
    %c0_16 = arith.constant 0 : index
    %22 = vector.load %arg4[%c2, %c0_16] : memref<3x32xf32, #tpu.memory_space<vmem>>, vector<1x32xf32>
    %23 = vector.broadcast %22 : vector<1x32xf32> to vector<8x32xf32>
    %24 = arith.addf %21, %23 : vector<8x32xf32>
    %cst_17 = arith.constant 0.000000e+00 : f32
    %25 = vector.broadcast %cst_17 : f32 to vector<8x32xf32>
    %26 = arith.maximumf %24, %25 : vector<8x32xf32>
    %27 = arith.truncf %26 : vector<8x32xf32> to vector<8x32xbf16>
    %c0_18 = arith.constant 0 : index
    %c0_19 = arith.constant 0 : index
    %28 = vector.load %arg5[%c0_18, %c0_19] : memref<32x256xbf16, #tpu.memory_space<vmem>>, vector<32x256xbf16>
    %cst_20 = arith.constant dense<0.000000e+00> : vector<8x256xf32>
    %29 = tpu.matmul %27, %28, %cst_20 {dimension_numbers = #tpu.dot_dimension_numbers<[1], [0], [0], [1], [0, 0, 1, 1], [], []>} : vector<8x32xbf16>, vector<32x256xbf16>, vector<8x256xf32> -> vector<8x256xf32>
    %c0_21 = arith.constant 0 : index
    %c0_22 = arith.constant 0 : index
    %30 = vector.load %arg6[%c0_21, %c0_22] : memref<1x256xf32, #tpu.memory_space<vmem>>, vector<1x256xf32>
    %31 = vector.broadcast %30 : vector<1x256xf32> to vector<8x256xf32>
    %32 = arith.addf %29, %31 : vector<8x256xf32>
    %33 = vector.extract_strided_slice %32 {offsets = [0, 0], sizes = [8, 128], strides = [1, 1]} : vector<8x256xf32> to vector<8x128xf32>
    %c0_23 = arith.constant 0 : index
    %c0_24 = arith.constant 0 : index
    %34 = vector.load %arg7[%c0_23, %c0_24] : memref<8x256xf32, #tpu.memory_space<vmem>>, vector<8x128xf32>
    tpu.vector_store %arg7[%c0_23, %c0_24], %33 {strides = array<i32>} : memref<8x256xf32, #tpu.memory_space<vmem>>, vector<8x128xf32>,
    %35 = vector.extract_strided_slice %32 {offsets = [0, 128], sizes = [8, 128], strides = [1, 1]} : vector<8x256xf32> to vector<8x128xf32>
    %36 = math.exp %35 : vector<8x128xf32>
    %cst_25 = arith.constant -2.000000e+01 : f32
    %cst_26 = arith.constant 2.000000e+00 : f32
    %37 = vector.broadcast %cst_25 : f32 to vector<8x128xf32>
    %38 = arith.maximumf %37, %36 : vector<8x128xf32>
    %39 = vector.broadcast %cst_26 : f32 to vector<8x128xf32>
    %40 = arith.minimumf %39, %38 : vector<8x128xf32>
    %c0_27 = arith.constant 0 : index
    %c128 = arith.constant 128 : index
    %41 = vector.load %arg7[%c0_27, %c128] : memref<8x256xf32, #tpu.memory_space<vmem>>, vector<8x128xf32>
    tpu.vector_store %arg7[%c0_27, %c128], %40 {strides = array<i32>} : memref<8x256xf32, #tpu.memory_space<vmem>>, vector<8x128xf32>,
    return
  }
  func.func @transform_0(%arg0: i32) -> (i32, i32) {
    %c0_i32 = arith.constant 0 : i32
    %c0_i32_0 = arith.constant 0 : i32
    return %arg0, %c0_i32 : i32, i32
  }
  func.func @transform_1(%arg0: i32) -> (i32, i32) {
    %c0_i32 = arith.constant 0 : i32
    %c0_i32_0 = arith.constant 0 : i32
    %c0_i32_1 = arith.constant 0 : i32
    return %c0_i32, %c0_i32_0 : i32, i32
  }
  func.func @transform_2(%arg0: i32) -> (i32, i32, i32) {
    %c0_i32 = arith.constant 0 : i32
    %c0_i32_0 = arith.constant 0 : i32
    %c0_i32_1 = arith.constant 0 : i32
    %c0_i32_2 = arith.constant 0 : i32
    return %c0_i32, %c0_i32_0, %c0_i32_1 : i32, i32, i32
  }
  func.func @transform_3(%arg0: i32) -> (i32, i32) {
    %c0_i32 = arith.constant 0 : i32
    %c0_i32_0 = arith.constant 0 : i32
    %c0_i32_1 = arith.constant 0 : i32
    return %c0_i32, %c0_i32_0 : i32, i32
  }
  func.func @transform_4(%arg0: i32) -> (i32, i32) {
    %c0_i32 = arith.constant 0 : i32
    %c0_i32_0 = arith.constant 0 : i32
    %c0_i32_1 = arith.constant 0 : i32
    return %c0_i32, %c0_i32_0 : i32, i32
  }
  func.func @transform_5(%arg0: i32) -> (i32, i32) {
    %c0_i32 = arith.constant 0 : i32
    %c0_i32_0 = arith.constant 0 : i32
    %c0_i32_1 = arith.constant 0 : i32
    return %c0_i32, %c0_i32_0 : i32, i32
  }
  func.func @transform_6(%arg0: i32) -> (i32, i32) {
    %c0_i32 = arith.constant 0 : i32
    %c0_i32_0 = arith.constant 0 : i32
    return %arg0, %c0_i32 : i32, i32
  }
}

module attributes {stable_mosaic.version = 11 : i64} {
  func.func @policy_kernel(%arg0: i32, %arg1: memref<8x16xf32, #tpu.memory_space<vmem>>, %arg2: memref<16x32xbf16, #tpu.memory_space<vmem>>, %arg3: memref<2x32x32xbf16, #tpu.memory_space<vmem>>, %arg4: memref<3x32xf32, #tpu.memory_space<vmem>>, %arg5: memref<32x256xbf16, #tpu.memory_space<vmem>>, %arg6: memref<1x256xf32, #tpu.memory_space<vmem>>, %arg7: memref<8x256xf32, #tpu.memory_space<vmem>>) attributes {dimension_semantics = [#tpu.dimension_semantics<parallel>], iteration_bounds = array<i64: 1>, scalar_prefetch = 0 : i64, scratch_operands = 0 : i64, tpu.core_type = #tpu.core_type<tc>, window_params = [{transform_indices = @transform_0, window_bounds = array<i64: 8, 16>}, {pipeline_mode = #tpu.pipeline_mode<synchronous>, transform_indices = @transform_1, window_bounds = array<i64: 16, 32>}, {pipeline_mode = #tpu.pipeline_mode<synchronous>, transform_indices = @transform_2, window_bounds = array<i64: 2, 32, 32>}, {pipeline_mode = #tpu.pipeline_mode<synchronous>, transform_indices = @transform_3, window_bounds = array<i64: 3, 32>}, {pipeline_mode = #tpu.pipeline_mode<synchronous>, transform_indices = @transform_4, window_bounds = array<i64: 32, 256>}, {pipeline_mode = #tpu.pipeline_mode<synchronous>, transform_indices = @transform_5, window_bounds = array<i64: 1, 256>}, {transform_indices = @transform_6, window_bounds = array<i64: 8, 256>}]} {
    %c0 = arith.constant 0 : index
    %c0_0 = arith.constant 0 : index
    %0 = vector.load %arg1[%c0, %c0_0] : memref<8x16xf32, #tpu.memory_space<vmem>>, vector<8x16xf32>
    %1 = arith.truncf %0 : vector<8x16xf32> to vector<8x16xbf16>
    %c0_1 = arith.constant 0 : index
    %c0_2 = arith.constant 0 : index
    %2 = vector.load %arg2[%c0_1, %c0_2] : memref<16x32xbf16, #tpu.memory_space<vmem>>, vector<16x32xbf16>
    %cst = arith.constant dense<0.000000e+00> : vector<8x32xf32>
    %3 = tpu.matmul %1, %2, %cst {dimension_numbers = #tpu.dot_dimension_numbers<[1], [0], [0], [1], [0, 0, 1, 1], [], []>} : vector<8x16xbf16>, vector<16x32xbf16>, vector<8x32xf32> -> vector<8x32xf32>
    %c0_3 = arith.constant 0 : index
    %c0_4 = arith.constant 0 : index
    %4 = vector.load %arg4[%c0_3, %c0_4] : memref<3x32xf32, #tpu.memory_space<vmem>>, vector<1x32xf32>
    %5 = vector.broadcast %4 : vector<1x32xf32> to vector<8x32xf32>
    %6 = arith.addf %3, %5 : vector<8x32xf32>
    %cst_5 = arith.constant 0.000000e+00 : f32
    %7 = vector.broadcast %cst_5 : f32 to vector<8x32xf32>
    %8 = arith.maximumf %6, %7 : vector<8x32xf32>
    %9 = arith.truncf %8 : vector<8x32xf32> to vector<8x32xbf16>
    %c0_6 = arith.constant 0 : index
    %c0_7 = arith.constant 0 : index
    %c0_8 = arith.constant 0 : index
    %10 = vector.load %arg3[%c0_6, %c0_7, %c0_8] : memref<2x32x32xbf16, #tpu.memory_space<vmem>>, vector<1x32x32xbf16>
    %11 = vector.shape_cast %10 : vector<1x32x32xbf16> to vector<32x32xbf16>
    %cst_9 = arith.constant dense<0.000000e+00> : vector<8x32xf32>
    %12 = tpu.matmul %9, %11, %cst_9 {dimension_numbers = #tpu.dot_dimension_numbers<[1], [0], [0], [1], [0, 0, 1, 1], [], []>} : vector<8x32xbf16>, vector<32x32xbf16>, vector<8x32xf32> -> vector<8x32xf32>
    %c1 = arith.constant 1 : index
    %c0_10 = arith.constant 0 : index
    %13 = vector.load %arg4[%c1, %c0_10] : memref<3x32xf32, #tpu.memory_space<vmem>>, vector<1x32xf32>
    %14 = vector.broadcast %13 : vector<1x32xf32> to vector<8x32xf32>
    %15 = arith.addf %12, %14 : vector<8x32xf32>
    %cst_11 = arith.constant 0.000000e+00 : f32
    %16 = vector.broadcast %cst_11 : f32 to vector<8x32xf32>
    %17 = arith.maximumf %15, %16 : vector<8x32xf32>
    %18 = arith.truncf %17 : vector<8x32xf32> to vector<8x32xbf16>
    %c1_12 = arith.constant 1 : index
    %c0_13 = arith.constant 0 : index
    %c0_14 = arith.constant 0 : index
    %19 = vector.load %arg3[%c1_12, %c0_13, %c0_14] : memref<2x32x32xbf16, #tpu.memory_space<vmem>>, vector<1x32x32xbf16>
    %20 = vector.shape_cast %19 : vector<1x32x32xbf16> to vector<32x32xbf16>
    %cst_15 = arith.constant dense<0.000000e+00> : vector<8x32xf32>
    %21 = tpu.matmul %18, %20, %cst_15 {dimension_numbers = #tpu.dot_dimension_numbers<[1], [0], [0], [1], [0, 0, 1, 1], [], []>} : vector<8x32xbf16>, vector<32x32xbf16>, vector<8x32xf32> -> vector<8x32xf32>
    %c2 = arith.constant 2 : index
    %c0_16 = arith.constant 0 : index
    %22 = vector.load %arg4[%c2, %c0_16] : memref<3x32xf32, #tpu.memory_space<vmem>>, vector<1x32xf32>
    %23 = vector.broadcast %22 : vector<1x32xf32> to vector<8x32xf32>
    %24 = arith.addf %21, %23 : vector<8x32xf32>
    %cst_17 = arith.constant 0.000000e+00 : f32
    %25 = vector.broadcast %cst_17 : f32 to vector<8x32xf32>
    %26 = arith.maximumf %24, %25 : vector<8x32xf32>
    %27 = arith.truncf %26 : vector<8x32xf32> to vector<8x32xbf16>
    %c0_18 = arith.constant 0 : index
    %c0_19 = arith.constant 0 : index
    %28 = vector.load %arg5[%c0_18, %c0_19] : memref<32x256xbf16, #tpu.memory_space<vmem>>, vector<32x256xbf16>
    %cst_20 = arith.constant dense<0.000000e+00> : vector<8x256xf32>
    %29 = tpu.matmul %27, %28, %cst_20 {dimension_numbers = #tpu.dot_dimension_numbers<[1], [0], [0], [1], [0, 0, 1, 1], [], []>} : vector<8x32xbf16>, vector<32x256xbf16>, vector<8x256xf32> -> vector<8x256xf32>
    %c0_21 = arith.constant 0 : index
    %c0_22 = arith.constant 0 : index
    %30 = vector.load %arg6[%c0_21, %c0_22] : memref<1x256xf32, #tpu.memory_space<vmem>>, vector<1x256xf32>
    %31 = vector.broadcast %30 : vector<1x256xf32> to vector<8x256xf32>
    %32 = arith.addf %29, %31 : vector<8x256xf32>
    %33 = vector.extract_strided_slice %32 {offsets = [0, 0], sizes = [8, 128], strides = [1, 1]} : vector<8x256xf32> to vector<8x128xf32>
    %c0_23 = arith.constant 0 : index
    %c0_24 = arith.constant 0 : index
    %34 = vector.load %arg7[%c0_23, %c0_24] : memref<8x256xf32, #tpu.memory_space<vmem>>, vector<8x128xf32>
    tpu.vector_store %arg7[%c0_23, %c0_24], %33 {strides = array<i32>} : memref<8x256xf32, #tpu.memory_space<vmem>>, vector<8x128xf32>,
    %35 = vector.extract_strided_slice %32 {offsets = [0, 128], sizes = [8, 128], strides = [1, 1]} : vector<8x256xf32> to vector<8x128xf32>
    %36 = math.exp %35 : vector<8x128xf32>
    %cst_25 = arith.constant -2.000000e+01 : f32
    %cst_26 = arith.constant 2.000000e+00 : f32
    %37 = vector.broadcast %cst_25 : f32 to vector<8x128xf32>
    %38 = arith.maximumf %37, %36 : vector<8x128xf32>
    %39 = vector.broadcast %cst_26 : f32 to vector<8x128xf32>
    %40 = arith.minimumf %39, %38 : vector<8x128xf32>
    %c0_27 = arith.constant 0 : index
    %c128 = arith.constant 128 : index
    %41 = vector.load %arg7[%c0_27, %c128] : memref<8x256xf32, #tpu.memory_space<vmem>>, vector<8x128xf32>
    tpu.vector_store %arg7[%c0_27, %c128], %40 {strides = array<i32>} : memref<8x256xf32, #tpu.memory_space<vmem>>, vector<8x128xf32>,
    return
  }
  func.func @transform_0(%arg0: i32) -> (i32, i32) {
    %c0_i32 = arith.constant 0 : i32
    %c0_i32_0 = arith.constant 0 : i32
    return %arg0, %c0_i32 : i32, i32
  }
  func.func @transform_1(%arg0: i32) -> (i32, i32) {
    %c0_i32 = arith.constant 0 : i32
    %c0_i32_0 = arith.constant 0 : i32
    %c0_i32_1 = arith.constant 0 : i32
    return %c0_i32, %c0_i32_0 : i32, i32
  }
  func.func @transform_2(%arg0: i32) -> (i32, i32, i32) {
    %c0_i32 = arith.constant 0 : i32
    %c0_i32_0 = arith.constant 0 : i32
    %c0_i32_1 = arith.constant 0 : i32
    %c0_i32_2 = arith.constant 0 : i32
    return %c0_i32, %c0_i32_0, %c0_i32_1 : i32, i32, i32
  }
  func.func @transform_3(%arg0: i32) -> (i32, i32) {
    %c0_i32 = arith.constant 0 : i32
    %c0_i32_0 = arith.constant 0 : i32
    %c0_i32_1 = arith.constant 0 : i32
    return %c0_i32, %c0_i32_0 : i32, i32
  }
  func.func @transform_4(%arg0: i32) -> (i32, i32) {
    %c0_i32 = arith.constant 0 : i32
    %c0_i32_0 = arith.constant 0 : i32
    %c0_i32_1 = arith.constant 0 : i32
    return %c0_i32, %c0_i32_0 : i32, i32
  }
  func.func @transform_5(%arg0: i32) -> (i32, i32) {
    %c0_i32 = arith.constant 0 : i32
    %c0_i32_0 = arith.constant 0 : i32
    %c0_i32_1 = arith.constant 0 : i32
    return %c0_i32, %c0_i32_0 : i32, i32
  }
  func.func @transform_6(%arg0: i32) -> (i32, i32) {
    %c0_i32 = arith.constant 0 : i32
    %c0_i32_0 = arith.constant 0 : i32
    return %arg0, %c0_i32 : i32, i32
  }
}

</mosaic_0001>

<bundles_post_ra>
// kernel: tpu_custom_call.1
= control target key start
LH: loop header
LB: loop body
LE: loop exit
PB: predicated region body
PF: predicated region fallthrough
CT: control target
= control target key end

     0   :  { %11 = vsyncpa [#allocation3], 0  ;;  %s693_s0 = inlined_call_operand.hbm [shape: f32[8,16], index: 0, kind: input, shape index: {}]   ;;  %s694_s1 = inlined_call_operand.hbm [shape: bf16[16,32], index: 1, kind: input, shape index: {}]   ;;  %s695_s2 = inlined_call_operand.hbm [shape: bf16[2,32,32], index: 2, kind: input, shape index: {}]   ;;  %s696_s3 = inlined_call_operand.vmem [shape: f32[3,32], index: 3, kind: input, shape index: {}]   ;;  %s697_s4 = inlined_call_operand.hbm [shape: bf16[32,256], index: 4, kind: input, shape index: {}]   ;;  %s698_s5 = inlined_call_operand.vmem [shape: f32[1,256], index: 5, kind: input, shape index: {}]   ;;  %s699_s6 = inlined_call_operand.hbm [shape: f32[8,256], index: 6, kind: output, shape index: {}]  }
   0x1   :  { %12 = vsyncpa [#allocation6], 0 }
   0x2   :  { %13 = vsyncpa [#allocation9], 0 }
   0x3   :  { %14 = vsyncpa [#allocation4], 0  ;;  %s565_s21 = smov [#allocation5]   ;;  %s447_s25 = scalar_lea.hbm %s694_s1, 128 }
   0x4   :  { %s30_s22 = sshll.u32 %s565_s21, 4  ;;  %p448_p0 = scmp.ne.s32.totalorder %s694_s1, %s447_s25  ;;  %s31_s22 = int_to_ptr.vmem [resolvable:$true] %s30_s22 }
   0x5   :  { %p451_p1 = scmp.lt.u32.totalorder %s447_s25, %s694_s1 }
   0x7   :  { %p453_p2 = pnand %p451_p1, %p448_p0 }
   0x9   :  { %456 = shalt.err (!%p453_p2)
}
   0xa   :  { %s457_s30 = scalar_lea.vmem %s31_s22, 128  ;;  %p462_p4 = scmp.lt.s32.totalorder %s31_s22, %s31_s22 }
   0xb   :  { %p458_p3 = scmp.ne.s32.totalorder %s31_s22, %s457_s30  ;;  %p463_p5 = scmp.lt.s32.totalorder %s457_s30, %s457_s30 }
   0xd   :  { %p464_p6 = por %p463_p5, %p462_p4 }
   0xf   :  { %p465_p7 = pnand %p464_p6, %p458_p3 }
  0x11   :  { %468 = shalt.err (!%p465_p7)
}
  0x12   :  { %s566_s7 = smov 64   ;;  %s567_s8 = smov 4  }
  0x13   :  { %36 = dma.hbm_to_vmem [thread:$0]  %s694_s1, 128, %s31_s22, [#allocation6], %s566_s7, %s566_s7, %s567_s8  }
  0x14   :  { %s568_s11 = smov [#allocation2]   ;;  %s569_s13 = smov [#allocation7]  }
  0x15   :  { %s21_s12 = sshll.u32 %s568_s11, 4  ;;  %s42_s14 = sshll.u32 %s569_s13, 4  ;;  %s22_s12 = int_to_ptr.vmem [resolvable:$true] %s21_s12  ;;  %s43_s14 = int_to_ptr.vmem [resolvable:$true] %s42_s14 }
  0x16   :  { %s469_s17 = scalar_lea.hbm %s693_s0, 128 }
  0x17   :  { %p470_p8 = scmp.ne.s32.totalorder %s693_s0, %s469_s17  ;;  %p473_p9 = scmp.lt.u32.totalorder %s469_s17, %s693_s0 }
  0x19   :  { %p475_p10 = pnand %p473_p9, %p470_p8 }
  0x1b   :  { %478 = shalt.err (!%p475_p10)
}
  0x1c   :  { %s479_s1 = scalar_lea.vmem %s22_s12, 128  ;;  %p484_p12 = scmp.lt.s32.totalorder %s22_s12, %s22_s12 }
  0x1d   :  { %p480_p11 = scmp.ne.s32.totalorder %s22_s12, %s479_s1  ;;  %p485_p13 = scmp.lt.s32.totalorder %s479_s1, %s479_s1 }
  0x1f   :  { %p486_p0 = por %p485_p13, %p484_p12 }
  0x21   :  { %p487_p1 = pnand %p486_p0, %p480_p11 }
  0x23   :  { %490 = shalt.err (!%p487_p1)
}
  0x24   :  { %24 = dma.hbm_to_vmem [thread:$0]  %s693_s0, 128, %s22_s12, [#allocation3]  }
  0x25   :  { %s491_s26 = scalar_lea.hbm %s695_s2, 512 }
  0x26   :  { %p492_p2 = scmp.ne.s32.totalorder %s695_s2, %s491_s26  ;;  %p495_p3 = scmp.lt.u32.totalorder %s491_s26, %s695_s2 }
  0x28   :  { %p497_p4 = pnand %p495_p3, %p492_p2 }
  0x2a   :  { %500 = shalt.err (!%p497_p4)
}
  0x2b   :  { %s501_s9 = scalar_lea.vmem %s43_s14, 512  ;;  %p506_p6 = scmp.lt.s32.totalorder %s43_s14, %s43_s14 }
  0x2c   :  { %p502_p5 = scmp.ne.s32.totalorder %s43_s14, %s501_s9  ;;  %p507_p7 = scmp.lt.s32.totalorder %s501_s9, %s501_s9 }
  0x2e   :  { %p508_p8 = por %p507_p7, %p506_p6 }
  0x30   :  { %p509_p9 = pnand %p508_p8, %p502_p5 }
  0x32   :  { %512 = shalt.err (!%p509_p9)
}
  0x33   :  { %48 = dma.hbm_to_vmem [thread:$0]  %s695_s2, 512, %s43_s14, [#allocation6], %s566_s7, %s566_s7, %s567_s8  }
  0x34   :  { %s570_s11 = smov [#allocation8]   ;;  %s513_s16 = scalar_lea.hbm %s697_s4, 512 }
  0x35   :  { %s56_s12 = sshll.u32 %s570_s11, 4  ;;  %p514_p10 = scmp.ne.s32.totalorder %s697_s4, %s513_s16  ;;  %s57_s12 = int_to_ptr.vmem [resolvable:$true] %s56_s12 }
  0x36   :  { %p517_p11 = scmp.lt.u32.totalorder %s513_s16, %s697_s4 }
  0x38   :  { %p519_p12 = pnand %p517_p11, %p514_p10 }
  0x3a   :  { %522 = shalt.err (!%p519_p12)
}
  0x3b   :  { %s523_s21 = scalar_lea.vmem %s57_s12, 512  ;;  %p528_p0 = scmp.lt.s32.totalorder %s57_s12, %s57_s12 }
  0x3c   :  { %p524_p13 = scmp.ne.s32.totalorder %s57_s12, %s523_s21  ;;  %p529_p1 = scmp.lt.s32.totalorder %s523_s21, %s523_s21 }
  0x3e   :  { %p530_p2 = por %p529_p1, %p528_p0 }
  0x40   :  { %p531_p3 = pnand %p530_p2, %p524_p13 }
  0x42   :  { %534 = shalt.err (!%p531_p3)
}
  0x43   :  { %s571_s2 = smov 128   ;;  %s572_s7 = smov 8  }
  0x44   :  { %62 = dma.hbm_to_vmem [thread:$0]  %s697_s4, 512, %s57_s12, [#allocation9], %s571_s2, %s571_s2, %s572_s7  }
  0x45   :  { %557 = dma.done.wait [#allocation3], 128  }
  0x46   :  { %558 = vsyncadd [#allocation3], 4294967168 }
  0x47   :  { %559 = dma.done.wait [#allocation6], 640  }
  0x48   :  { %560 = vsyncadd [#allocation6], 4294966656 }
  0x49   :  { %561 = dma.done.wait [#allocation9], 512  }
  0x4a   :  { %562 = vsyncadd [#allocation9], 4294966784  ;;  %v573_v0 = vmov 0.0   ;;  %vm574_vm0 = vmmov 0   ;;  %v434_v1 = vld [vmem:[#allocation5] sm:$0xff]   ;;  %v78_v2 = vld [vmem:[#allocation2] sm:$0xff]  ;;  %v279_v37 = vlaneseq }
  0x4b   :  { %400 = vmatprep.subr.bf16.mxu0 %v573_v0  ;;  %402 = vmatprep.mubr.msk.bf16.mxu0 %vm574_vm0, %v573_v0  ;;  %vm93_vm1 = vcmask 130048   ;;  %v79_v3 = vpack.c.bf16 %v78_v2, %v78_v2  ;;  %v435_v4 = vld [vmem:[#allocation7] sm:$0xff]   ;;  %v436_v5 = vld [vmem:[#allocation7 + $0x8] sm:$0xff]   ;;  %v437_v6 = vld [vmem:[#allocation7 + $0x10] sm:$0xff]   ;;  %vm160_vm2 = vcmask 261120   ;;  %v575_v28 = vmov 0  }
  0x4c   :  { %406 = vmatprep.subr.bf16.mxu1 %v573_v0  ;;  %410 = vmatprep.mubr.msk.bf16.mxu1 %vm574_vm0, %v573_v0  ;;  %v376_v7 = vld [vmem:[%s696_s3] ss:$0 sm:$0xff]  ;;  %v438_v15 = vld [vmem:[#allocation7 + $0x18] sm:$0xff]   ;;  %v439_v16 = vld [vmem:[#allocation8] ss:$8 sps:$4 sm:$0xff]   ;;  %v280_v38 = vshrl.u32 %v279_v37, 7 }
  0x4d   :  { %401 = vmatpush3.bf16.msra.mxu0 %v434_v1  ;;  %407 = vmatpush3.bf16.msra.mxu1 %v435_v4  ;;  %v441_v17 = vld [vmem:[#allocation8 + $0x4] ss:$8 sps:$4 sm:$0xff]   ;;  %v379_v18 = vld [vmem:[%s696_s3 + $0x1] ss:$0 sm:$0xff]  ;;  %v444_v26 = vld [vmem:[#allocation8 + $0x14] ss:$8 sps:$4 sm:$0xff]  }
  0x4e   :  { %414 = vmatprep.subr.bf16.mxu0 %v573_v0  ;;  %408 = vmatprep.subr.bf16.mxu1 %v573_v0  ;;  %v442_v27 = vld [vmem:[#allocation8 + $0x10] ss:$8 sps:$4 sm:$0xff]   ;;  %v281_v39 = vsub.s32 0, %v280_v38  ;;  %v285_v41 = vsub.s32 1, %v280_v38 }
  0x4f   :  { %v383_v29 = vld [vmem:[%s696_s3 + $0x2] ss:$0 sm:$0xff]  ;;  %v277_v40 = vld [vmem:[%s698_s5] sm:$0x3]  ;;  %s576_s3 = smov [#allocation10]  }
  0x50   :  { %403 = vmatmul.mubr.msk.bf16.vlgmr.msra.gmra.mrb[0].mxu0 %vm93_vm1, %v79_v3  ;;  %v282_v42 = vrot.slane %v277_v40, %v281_v39  ;;  %v286_v43 = vrot.slane %v277_v40, %v285_v41  ;;  %s365_s28 = sshll.u32 %s576_s3, 4  ;;  %s366_s28 = int_to_ptr.vmem [resolvable:$true] %s365_s28 }
  0x51   :  { %418 = vmatprep.mubr.msk.bf16.mxu0 %vm574_vm0, %v573_v0  ;;  %409 = vmatpush3.bf16.msra.mxu1 %v436_v5  ;;  %s535_s5 = scalar_lea.vmem %s366_s28, 256  ;;  %p540_p5 = scmp.lt.s32.totalorder %s366_s28, %s366_s28 }
  0x52   :  { %415 = vmatpush3.bf16.msra.mxu0 %v437_v6  ;;  %312 = vmatprep.subr.bf16.mxu1 %v441_v17  ;;  %p536_p4 = scmp.ne.s32.totalorder %s366_s28, %s535_s5  ;;  %p541_p6 = scmp.lt.s32.totalorder %s535_s5, %s535_s5 }
  0x53   :  { %416 = vmatprep.subr.bf16.mxu0 %v573_v0 }
  0x54   :  { %p542_p7 = por %p541_p6, %p540_p5 }
  0x56   :  { %417 = vmatpush3.bf16.msra.mxu0 %v438_v15  ;;  %p543_p8 = pnand %p542_p7, %p536_p4 }
 0x123   :  { %v131_v8 = vpop.f32.mrb[0].mxu0 }
 0x124   :  { %v132_v9 = vadd.f32 %v376_v7, %v131_v8  ;;  %v404_v10 = vpop.f32.mrb[1].mxu0 }
 0x125   :  { %v134_v11 = vpop.f32.mrb[2].mxu0 }
 0x126   :  { %v137_v12 = vmax.f32 %v132_v9, 0.0  ;;  %v405_v13 = vpop.f32.mrb[3].mxu0 }
 0x128   :  { %v138_v14 = vpack.c.bf16 %v137_v12, %v137_v12 }
 0x12a   :  { %411 = vmatmul.mubr.msk.bf16.vlgmr.msra.gmra.mrb[0].mxu1 %vm160_vm2, %v138_v14 }
 0x12b   :  { %313 = vmatpush1.bf16.msra.mxu1 %v439_v16  ;;  %344 = vmatprep.mubr.bf16.mxu1 %v575_v28 }
 0x12c   :  { %314 = vmatprep.subr.bf16.mxu1 %v444_v26 }
 0x12f   :  { %315 = vmatpush1.bf16.msra.mxu1 %v442_v27 }
 0x1fd   :  { %v198_v19 = vpop.f32.mrb[0].mxu1 }
 0x1fe   :  { %v199_v20 = vadd.f32 %v379_v18, %v198_v19  ;;  %v412_v21 = vpop.f32.mrb[1].mxu1 }
 0x1ff   :  { %v201_v22 = vpop.f32.mrb[2].mxu1 }
 0x200   :  { %v204_v23 = vmax.f32 %v199_v20, 0.0  ;;  %v413_v24 = vpop.f32.mrb[3].mxu1 }
 0x202   :  { %v205_v25 = vpack.c.bf16 %v204_v23, %v204_v23 }
 0x204   :  { %419 = vmatmul.mubr.msk.bf16.vlgmr.msra.gmra.mrb[4].mxu0 %vm160_vm2, %v205_v25 }
 0x2d7   :  { %v265_v30 = vpop.f32.mrb[4].mxu0 }
 0x2d8   :  { %v266_v31 = vadd.f32 %v383_v29, %v265_v30  ;;  %v420_v32 = vpop.f32.mrb[5].mxu0 }
 0x2d9   :  { %v268_v33 = vpop.f32.mrb[6].mxu0 }
 0x2da   :  { %v271_v34 = vmax.f32 %v266_v31, 0.0  ;;  %v421_v35 = vpop.f32.mrb[7].mxu0 }
 0x2dc   :  { %v272_v36 = vpack.c.bf16 %v271_v34, %v271_v34 }
 0x2de   :  { %391 = vmatmul.mubr.msk.bf16.vlgmr.msra.gmra.mrb[4].mxu1 %vm160_vm2, %v272_v36 }
 0x3b1   :  { %v346_v44 = vpop.f32.mrb[4].mxu1 }
 0x3b2   :  { %v347_v45 = vadd.f32 %v346_v44, %v282_v42  ;;  %v348_v46 = vpop.f32.mrb[5].mxu1 }
 0x3b3   :  { %v349_v47 = vadd.f32 %v348_v46, %v286_v43  ;;  %v350_v48 = vpop.f32.mrb[6].mxu1 }
 0x3b4   :  { %353 = vst [vmem:[#allocation10] sm:$0xff] %v347_v45  ;;  %v351_v49 = vpop.f32.mrb[7].mxu1 }
 0x3b5   :  { %v354_v50 = vmul.f32 1.442695, %v349_v47 }
 0x3b7   :  { %445 = vpow2.f32 %v354_v50 }
 0x3c1   :  { %v446_v51 = vpop.eup %445 }
 0x3c2   :  { %v356_v52 = vmax.f32 %v446_v51, -20.0 }
 0x3c4   :  { %v357_v53 = vmin.f32 %v356_v52, 2.0 }
 0x3c6   :  { %358 = vst [vmem:[#allocation10 + $0x8] sm:$0xff] %v357_v53 }
 0x3c7   :  { %546 = shalt.err (!%p543_p8)
}
 0x3c8   :  { %s547_s9 = scalar_lea.hbm %s699_s6, 256 }
 0x3c9   :  { %p548_p9 = scmp.ne.s32.totalorder %s699_s6, %s547_s9  ;;  %p551_p10 = scmp.lt.u32.totalorder %s547_s9, %s699_s6 }
 0x3cb   :  { %p553_p11 = pnand %p551_p10, %p548_p9 }
 0x3cd   :  { %556 = shalt.err (!%p553_p11)
}
 0x3ce   :  { %368 = dma.vmem_to_hbm [thread:$0]  %s366_s28, 256, %s699_s6, [#allocation4]  }
 0x3cf   :  { %563 = dma.done.wait [#allocation4], 256  }
 0x3d0   :  { %564 = vsyncadd [#allocation4], 4294967040 }
 0x3d1   :  { %372 = vsyncpa [#allocation3], 1 }
 0x3d2   :  { %373 = vsyncpa [#allocation6], 1 }
 0x3d3   :  { %374 = vsyncpa [#allocation9], 1 }
 0x3d4   :  { %375 = vsyncpa [#allocation4], 1 }

// kernel: tpu_custom_call.1
= control target key start
LH: loop header
LB: loop body
LE: loop exit
PB: predicated region body
PF: predicated region fallthrough
CT: control target
= control target key end

     0   :  { %11 = vsyncpa [#allocation3], 0  ;;  %s693_s0 = inlined_call_operand.hbm [shape: f32[8,16], index: 0, kind: input, shape index: {}]   ;;  %s694_s1 = inlined_call_operand.hbm [shape: bf16[16,32], index: 1, kind: input, shape index: {}]   ;;  %s695_s2 = inlined_call_operand.hbm [shape: bf16[2,32,32], index: 2, kind: input, shape index: {}]   ;;  %s696_s3 = inlined_call_operand.vmem [shape: f32[3,32], index: 3, kind: input, shape index: {}]   ;;  %s697_s4 = inlined_call_operand.hbm [shape: bf16[32,256], index: 4, kind: input, shape index: {}]   ;;  %s698_s5 = inlined_call_operand.vmem [shape: f32[1,256], index: 5, kind: input, shape index: {}]   ;;  %s699_s6 = inlined_call_operand.hbm [shape: f32[8,256], index: 6, kind: output, shape index: {}]  }
   0x1   :  { %12 = vsyncpa [#allocation6], 0 }
   0x2   :  { %13 = vsyncpa [#allocation9], 0 }
   0x3   :  { %14 = vsyncpa [#allocation4], 0  ;;  %s565_s21 = smov [#allocation5]   ;;  %s447_s25 = scalar_lea.hbm %s694_s1, 128 }
   0x4   :  { %s30_s22 = sshll.u32 %s565_s21, 4  ;;  %p448_p0 = scmp.ne.s32.totalorder %s694_s1, %s447_s25  ;;  %s31_s22 = int_to_ptr.vmem [resolvable:$true] %s30_s22 }
   0x5   :  { %p451_p1 = scmp.lt.u32.totalorder %s447_s25, %s694_s1 }
   0x7   :  { %p453_p2 = pnand %p451_p1, %p448_p0 }
   0x9   :  { %456 = shalt.err (!%p453_p2)
}
   0xa   :  { %s457_s30 = scalar_lea.vmem %s31_s22, 128  ;;  %p462_p4 = scmp.lt.s32.totalorder %s31_s22, %s31_s22 }
   0xb   :  { %p458_p3 = scmp.ne.s32.totalorder %s31_s22, %s457_s30  ;;  %p463_p5 = scmp.lt.s32.totalorder %s457_s30, %s457_s30 }
   0xd   :  { %p464_p6 = por %p463_p5, %p462_p4 }
   0xf   :  { %p465_p7 = pnand %p464_p6, %p458_p3 }
  0x11   :  { %468 = shalt.err (!%p465_p7)
}
  0x12   :  { %s566_s7 = smov 64   ;;  %s567_s8 = smov 4  }
  0x13   :  { %36 = dma.hbm_to_vmem [thread:$0]  %s694_s1, 128, %s31_s22, [#allocation6], %s566_s7, %s566_s7, %s567_s8  }
  0x14   :  { %s568_s11 = smov [#allocation2]   ;;  %s569_s13 = smov [#allocation7]  }
  0x15   :  { %s21_s12 = sshll.u32 %s568_s11, 4  ;;  %s42_s14 = sshll.u32 %s569_s13, 4  ;;  %s22_s12 = int_to_ptr.vmem [resolvable:$true] %s21_s12  ;;  %s43_s14 = int_to_ptr.vmem [resolvable:$true] %s42_s14 }
  0x16   :  { %s469_s17 = scalar_lea.hbm %s693_s0, 128 }
  0x17   :  { %p470_p8 = scmp.ne.s32.totalorder %s693_s0, %s469_s17  ;;  %p473_p9 = scmp.lt.u32.totalorder %s469_s17, %s693_s0 }
  0x19   :  { %p475_p10 = pnand %p473_p9, %p470_p8 }
  0x1b   :  { %478 = shalt.err (!%p475_p10)
}
  0x1c   :  { %s479_s1 = scalar_lea.vmem %s22_s12, 128  ;;  %p484_p12 = scmp.lt.s32.totalorder %s22_s12, %s22_s12 }
  0x1d   :  { %p480_p11 = scmp.ne.s32.totalorder %s22_s12, %s479_s1  ;;  %p485_p13 = scmp.lt.s32.totalorder %s479_s1, %s479_s1 }
  0x1f   :  { %p486_p0 = por %p485_p13, %p484_p12 }
  0x21   :  { %p487_p1 = pnand %p486_p0, %p480_p11 }
  0x23   :  { %490 = shalt.err (!%p487_p1)
}
  0x24   :  { %24 = dma.hbm_to_vmem [thread:$0]  %s693_s0, 128, %s22_s12, [#allocation3]  }
  0x25   :  { %s491_s26 = scalar_lea.hbm %s695_s2, 512 }
  0x26   :  { %p492_p2 = scmp.ne.s32.totalorder %s695_s2, %s491_s26  ;;  %p495_p3 = scmp.lt.u32.totalorder %s491_s26, %s695_s2 }
  0x28   :  { %p497_p4 = pnand %p495_p3, %p492_p2 }
  0x2a   :  { %500 = shalt.err (!%p497_p4)
}
  0x2b   :  { %s501_s9 = scalar_lea.vmem %s43_s14, 512  ;;  %p506_p6 = scmp.lt.s32.totalorder %s43_s14, %s43_s14 }
  0x2c   :  { %p502_p5 = scmp.ne.s32.totalorder %s43_s14, %s501_s9  ;;  %p507_p7 = scmp.lt.s32.totalorder %s501_s9, %s501_s9 }
  0x2e   :  { %p508_p8 = por %p507_p7, %p506_p6 }
  0x30   :  { %p509_p9 = pnand %p508_p8, %p502_p5 }
  0x32   :  { %512 = shalt.err (!%p509_p9)
}
  0x33   :  { %48 = dma.hbm_to_vmem [thread:$0]  %s695_s2, 512, %s43_s14, [#allocation6], %s566_s7, %s566_s7, %s567_s8  }
  0x34   :  { %s570_s11 = smov [#allocation8]   ;;  %s513_s16 = scalar_lea.hbm %s697_s4, 512 }
  0x35   :  { %s56_s12 = sshll.u32 %s570_s11, 4  ;;  %p514_p10 = scmp.ne.s32.totalorder %s697_s4, %s513_s16  ;;  %s57_s12 = int_to_ptr.vmem [resolvable:$true] %s56_s12 }
  0x36   :  { %p517_p11 = scmp.lt.u32.totalorder %s513_s16, %s697_s4 }
  0x38   :  { %p519_p12 = pnand %p517_p11, %p514_p10 }
  0x3a   :  { %522 = shalt.err (!%p519_p12)
}
  0x3b   :  { %s523_s21 = scalar_lea.vmem %s57_s12, 512  ;;  %p528_p0 = scmp.lt.s32.totalorder %s57_s12, %s57_s12 }
  0x3c   :  { %p524_p13 = scmp.ne.s32.totalorder %s57_s12, %s523_s21  ;;  %p529_p1 = scmp.lt.s32.totalorder %s523_s21, %s523_s21 }
  0x3e   :  { %p530_p2 = por %p529_p1, %p528_p0 }
  0x40   :  { %p531_p3 = pnand %p530_p2, %p524_p13 }
  0x42   :  { %534 = shalt.err (!%p531_p3)
}
  0x43   :  { %s571_s2 = smov 128   ;;  %s572_s7 = smov 8  }
  0x44   :  { %62 = dma.hbm_to_vmem [thread:$0]  %s697_s4, 512, %s57_s12, [#allocation9], %s571_s2, %s571_s2, %s572_s7  }
  0x45   :  { %557 = dma.done.wait [#allocation3], 128  }
  0x46   :  { %558 = vsyncadd [#allocation3], 4294967168 }
  0x47   :  { %559 = dma.done.wait [#allocation6], 640  }
  0x48   :  { %560 = vsyncadd [#allocation6], 4294966656 }
  0x49   :  { %561 = dma.done.wait [#allocation9], 512  }
  0x4a   :  { %562 = vsyncadd [#allocation9], 4294966784  ;;  %v573_v0 = vmov 0.0   ;;  %vm574_vm0 = vmmov 0   ;;  %v434_v1 = vld [vmem:[#allocation5] sm:$0xff]   ;;  %v78_v2 = vld [vmem:[#allocation2] sm:$0xff]  ;;  %v279_v37 = vlaneseq }
  0x4b   :  { %400 = vmatprep.subr.bf16.mxu0 %v573_v0  ;;  %402 = vmatprep.mubr.msk.bf16.mxu0 %vm574_vm0, %v573_v0  ;;  %vm93_vm1 = vcmask 130048   ;;  %v79_v3 = vpack.c.bf16 %v78_v2, %v78_v2  ;;  %v435_v4 = vld [vmem:[#allocation7] sm:$0xff]   ;;  %v436_v5 = vld [vmem:[#allocation7 + $0x8] sm:$0xff]   ;;  %v437_v6 = vld [vmem:[#allocation7 + $0x10] sm:$0xff]   ;;  %vm160_vm2 = vcmask 261120   ;;  %v575_v28 = vmov 0  }
  0x4c   :  { %406 = vmatprep.subr.bf16.mxu1 %v573_v0  ;;  %410 = vmatprep.mubr.msk.bf16.mxu1 %vm574_vm0, %v573_v0  ;;  %v376_v7 = vld [vmem:[%s696_s3] ss:$0 sm:$0xff]  ;;  %v438_v15 = vld [vmem:[#allocation7 + $0x18] sm:$0xff]   ;;  %v439_v16 = vld [vmem:[#allocation8] ss:$8 sps:$4 sm:$0xff]   ;;  %v280_v38 = vshrl.u32 %v279_v37, 7 }
  0x4d   :  { %401 = vmatpush3.bf16.msra.mxu0 %v434_v1  ;;  %407 = vmatpush3.bf16.msra.mxu1 %v435_v4  ;;  %v441_v17 = vld [vmem:[#allocation8 + $0x4] ss:$8 sps:$4 sm:$0xff]   ;;  %v379_v18 = vld [vmem:[%s696_s3 + $0x1] ss:$0 sm:$0xff]  ;;  %v444_v26 = vld [vmem:[#allocation8 + $0x14] ss:$8 sps:$4 sm:$0xff]  }
  0x4e   :  { %414 = vmatprep.subr.bf16.mxu0 %v573_v0  ;;  %408 = vmatprep.subr.bf16.mxu1 %v573_v0  ;;  %v442_v27 = vld [vmem:[#allocation8 + $0x10] ss:$8 sps:$4 sm:$0xff]   ;;  %v281_v39 = vsub.s32 0, %v280_v38  ;;  %v285_v41 = vsub.s32 1, %v280_v38 }
  0x4f   :  { %v383_v29 = vld [vmem:[%s696_s3 + $0x2] ss:$0 sm:$0xff]  ;;  %v277_v40 = vld [vmem:[%s698_s5] sm:$0x3]  ;;  %s576_s3 = smov [#allocation10]  }
  0x50   :  { %403 = vmatmul.mubr.msk.bf16.vlgmr.msra.gmra.mrb[0].mxu0 %vm93_vm1, %v79_v3  ;;  %v282_v42 = vrot.slane %v277_v40, %v281_v39  ;;  %v286_v43 = vrot.slane %v277_v40, %v285_v41  ;;  %s365_s28 = sshll.u32 %s576_s3, 4  ;;  %s366_s28 = int_to_ptr.vmem [resolvable:$true] %s365_s28 }
  0x51   :  { %418 = vmatprep.mubr.msk.bf16.mxu0 %vm574_vm0, %v573_v0  ;;  %409 = vmatpush3.bf16.msra.mxu1 %v436_v5  ;;  %s535_s5 = scalar_lea.vmem %s366_s28, 256  ;;  %p540_p5 = scmp.lt.s32.totalorder %s366_s28, %s366_s28 }
  0x52   :  { %415 = vmatpush3.bf16.msra.mxu0 %v437_v6  ;;  %312 = vmatprep.subr.bf16.mxu1 %v441_v17  ;;  %p536_p4 = scmp.ne.s32.totalorder %s366_s28, %s535_s5  ;;  %p541_p6 = scmp.lt.s32.totalorder %s535_s5, %s535_s5 }
  0x53   :  { %416 = vmatprep.subr.bf16.mxu0 %v573_v0 }
  0x54   :  { %p542_p7 = por %p541_p6, %p540_p5 }
  0x56   :  { %417 = vmatpush3.bf16.msra.mxu0 %v438_v15  ;;  %p543_p8 = pnand %p542_p7, %p536_p4 }
 0x123   :  { %v131_v8 = vpop.f32.mrb[0].mxu0 }
 0x124   :  { %v132_v9 = vadd.f32 %v376_v7, %v131_v8  ;;  %v404_v10 = vpop.f32.mrb[1].mxu0 }
 0x125   :  { %v134_v11 = vpop.f32.mrb[2].mxu0 }
 0x126   :  { %v137_v12 = vmax.f32 %v132_v9, 0.0  ;;  %v405_v13 = vpop.f32.mrb[3].mxu0 }
 0x128   :  { %v138_v14 = vpack.c.bf16 %v137_v12, %v137_v12 }
 0x12a   :  { %411 = vmatmul.mubr.msk.bf16.vlgmr.msra.gmra.mrb[0].mxu1 %vm160_vm2, %v138_v14 }
 0x12b   :  { %313 = vmatpush1.bf16.msra.mxu1 %v439_v16  ;;  %344 = vmatprep.mubr.bf16.mxu1 %v575_v28 }
 0x12c   :  { %314 = vmatprep.subr.bf16.mxu1 %v444_v26 }
 0x12f   :  { %315 = vmatpush1.bf16.msra.mxu1 %v442_v27 }
 0x1fd   :  { %v198_v19 = vpop.f32.mrb[0].mxu1 }
 0x1fe   :  { %v199_v20 = vadd.f32 %v379_v18, %v198_v19  ;;  %v412_v21 = vpop.f32.mrb[1].mxu1 }
 0x1ff   :  { %v201_v22 = vpop.f32.mrb[2].mxu1 }
 0x200   :  { %v204_v23 = vmax.f32 %v199_v20, 0.0  ;;  %v413_v24 = vpop.f32.mrb[3].mxu1 }
 0x202   :  { %v205_v25 = vpack.c.bf16 %v204_v23, %v204_v23 }
 0x204   :  { %419 = vmatmul.mubr.msk.bf16.vlgmr.msra.gmra.mrb[4].mxu0 %vm160_vm2, %v205_v25 }
 0x2d7   :  { %v265_v30 = vpop.f32.mrb[4].mxu0 }
 0x2d8   :  { %v266_v31 = vadd.f32 %v383_v29, %v265_v30  ;;  %v420_v32 = vpop.f32.mrb[5].mxu0 }
 0x2d9   :  { %v268_v33 = vpop.f32.mrb[6].mxu0 }
 0x2da   :  { %v271_v34 = vmax.f32 %v266_v31, 0.0  ;;  %v421_v35 = vpop.f32.mrb[7].mxu0 }
 0x2dc   :  { %v272_v36 = vpack.c.bf16 %v271_v34, %v271_v34 }
 0x2de   :  { %391 = vmatmul.mubr.msk.bf16.vlgmr.msra.gmra.mrb[4].mxu1 %vm160_vm2, %v272_v36 }
 0x3b1   :  { %v346_v44 = vpop.f32.mrb[4].mxu1 }
 0x3b2   :  { %v347_v45 = vadd.f32 %v346_v44, %v282_v42  ;;  %v348_v46 = vpop.f32.mrb[5].mxu1 }
 0x3b3   :  { %v349_v47 = vadd.f32 %v348_v46, %v286_v43  ;;  %v350_v48 = vpop.f32.mrb[6].mxu1 }
 0x3b4   :  { %353 = vst [vmem:[#allocation10] sm:$0xff] %v347_v45  ;;  %v351_v49 = vpop.f32.mrb[7].mxu1 }
 0x3b5   :  { %v354_v50 = vmul.f32 1.442695, %v349_v47 }
 0x3b7   :  { %445 = vpow2.f32 %v354_v50 }
 0x3c1   :  { %v446_v51 = vpop.eup %445 }
 0x3c2   :  { %v356_v52 = vmax.f32 %v446_v51, -20.0 }
 0x3c4   :  { %v357_v53 = vmin.f32 %v356_v52, 2.0 }
 0x3c6   :  { %358 = vst [vmem:[#allocation10 + $0x8] sm:$0xff] %v357_v53 }
 0x3c7   :  { %546 = shalt.err (!%p543_p8)
}
 0x3c8   :  { %s547_s9 = scalar_lea.hbm %s699_s6, 256 }
 0x3c9   :  { %p548_p9 = scmp.ne.s32.totalorder %s699_s6, %s547_s9  ;;  %p551_p10 = scmp.lt.u32.totalorder %s547_s9, %s699_s6 }
 0x3cb   :  { %p553_p11 = pnand %p551_p10, %p548_p9 }
 0x3cd   :  { %556 = shalt.err (!%p553_p11)
}
 0x3ce   :  { %368 = dma.vmem_to_hbm [thread:$0]  %s366_s28, 256, %s699_s6, [#allocation4]  }
 0x3cf   :  { %563 = dma.done.wait [#allocation4], 256  }
 0x3d0   :  { %564 = vsyncadd [#allocation4], 4294967040 }
 0x3d1   :  { %372 = vsyncpa [#allocation3], 1 }
 0x3d2   :  { %373 = vsyncpa [#allocation6], 1 }
 0x3d3   :  { %374 = vsyncpa [#allocation9], 1 }
 0x3d4   :  { %375 = vsyncpa [#allocation4], 1 }

</bundles_post_ra>
